<compile_context>
chip_gen: v7x
topology: tpu7x:2x2x1
jax: 0.10.0
libtpu: 0.0.40
codegen_flags: <defaults>
</compile_context>

<pallas_src>
import functools

import jax
import jax.numpy as jnp
from jax.experimental import pallas as pl
from jax.experimental.pallas import tpu as pltpu

HIDDEN = 128
LANE = 128


def _sigmoid_via_tanh(v):
    # sigmoid(x) = 0.5 * tanh(0.5 * x) + 0.5  -> uses the EUP tanh unit, no VALU divide.
    return 0.5 * jnp.tanh(0.5 * v) + 0.5


def policy_kernel(
    x_ref, h_ref, m_ref,
    w1_ref, b1_ref, w2_ref, b2_ref,
    wrz_ref, brz_ref, win_ref, bin_ref, whn_ref, bhn_ref,
    wav1_ref, bav1_ref, wa2_ref, ba2_ref,
    wv2_ref, bv2_ref, wv3_ref, bv3_ref,
    value_ref, actions_ref, states_ref,
):
    f32 = jnp.float32
    bf16 = jnp.bfloat16
    dot = functools.partial(jnp.dot, preferred_element_type=f32)

    x = x_ref[...]                               # [B, Kp]  bf16 (zero-padded input)
    h_prev = h_ref[...] * m_ref[...]             # [B, H]   f32  (states * masks)

    # trunk: tanh(fc2(tanh(fc1(x))))
    x1 = jnp.tanh(dot(x, w1_ref[...]) + b1_ref[...])
    x2 = jnp.tanh(dot(x1.astype(bf16), w2_ref[...]) + b2_ref[...])

    # GRU cell (PyTorch semantics, gate order [r, z, n]).
    # r/z gate matmuls fused into a single MXU-shaped [B,2H]@[2H,2H] dot; the n gate
    # keeps separate ih/hh dots because its hh contribution is scaled by r.
    xh = jnp.concatenate([x2, h_prev], axis=-1).astype(bf16)        # [B, 2H]
    rz = dot(xh, wrz_ref[...]) + brz_ref[...]                       # biases pre-merged
    r = _sigmoid_via_tanh(rz[:, :HIDDEN])
    z = _sigmoid_via_tanh(rz[:, HIDDEN:])
    gi_n = dot(x2.astype(bf16), win_ref[...]) + bin_ref[...]
    gh_n = dot(h_prev.astype(bf16), whn_ref[...]) + bhn_ref[...]
    n = jnp.tanh(gi_n + r * gh_n)
    h_new = (1.0 - z) * n + z * h_prev
    states_ref[...] = h_new

    # actor + value first layers fused: one [B,128]@[128,256] dot from h_new.
    av = jnp.tanh(dot(h_new.astype(bf16), wav1_ref[...]) + bav1_ref[...])
    a1 = av[:, :HIDDEN]
    v1 = av[:, HIDDEN:]

    # actor head (no activation after a_fc2 -- matches the reference module)
    actions_ref[...] = dot(a1.astype(bf16), wa2_ref[...]) + ba2_ref[...]

    # value head; final 128->1 projection as a lane reduce instead of an N=1 MXU matmul
    v2 = jnp.tanh(dot(v1.astype(bf16), wv2_ref[...]) + bv2_ref[...])
    value_ref[...] = jnp.sum(v2 * wv3_ref[...], axis=-1, keepdims=True) + bv3_ref[...]


@functools.partial(jax.jit, donate_argnums=(1,))
def policy_forward(inputs, states, masks, kp):
    """inputs: [B, ...] (flattened); states: [B,128] f32 (donated, updated in place); masks: [B,1]."""
    # TODO(synk): for rollout workloads, run T timesteps inside one pallas_call
    # (grid=(T,), weights resident in VMEM, state carried in scratch) to amortize
    # launch overhead and weight DMA; single-step API kept here to match Policy.forward.
    B = inputs.shape[0]
    x = inputs.reshape(B, -1).astype(jnp.float32)        # inputs.view(-1, batch_numel)
    k_pad = kp["w1"].shape[0]
    if x.shape[1] < k_pad:
        x = jnp.pad(x, ((0, 0), (0, k_pad - x.shape[1])))
    x = x.astype(jnp.bfloat16)
    states = states.astype(jnp.float32)
    masks = masks.astype(jnp.float32)

    args = (
        x, states, masks,
        kp["w1"], kp["b1"], kp["w2"], kp["b2"],
        kp["w_rz"], kp["b_rz"], kp["w_in"], kp["b_in"], kp["w_hn"], kp["b_hn"],
        kp["w_av1"], kp["b_av1"], kp["wa2"], kp["ba2"],
        kp["wv2"], kp["bv2"], kp["wv3_row"], kp["bv3"],
    )

    vmem = pl.BlockSpec(memory_space=pltpu.MemorySpace.VMEM)
    out_shape = (
        jax.ShapeDtypeStruct((B, 1), jnp.float32),       # value
        jax.ShapeDtypeStruct((B, HIDDEN), jnp.float32),  # actions (pre-dist features)
        jax.ShapeDtypeStruct((B, HIDDEN), jnp.float32),  # new states
    )
    return pl.pallas_call(
        policy_kernel,
        out_shape=out_shape,
        in_specs=[vmem] * len(args),
        out_specs=(vmem, vmem, vmem),
        input_output_aliases={1: 2},   # states input -> new-states output (in-place update)
    )(*args)


# ---------------------------------------------------------------------------
# Deterministic parameter construction (synthetic init; shapes per Policy.__init__)
# ---------------------------------------------------------------------------
def make_params(key, num_inputs):
    ks = jax.random.split(key, 16)

    def linear(k, fan_in, fan_out):
        std = (2.0 / (fan_in + fan_out)) ** 0.5
        w = std * jax.random.normal(k, (fan_in, fan_out), jnp.float32)
        b = jnp.zeros((1, fan_out), jnp.float32)
        return w, b

    p = {}
    p["w1"], p["b1"] = linear(ks[0], num_inputs, HIDDEN)
    p["w2"], p["b2"] = linear(ks[1], HIDDEN, HIDDEN)
    # GRU weights (stand-in for orthogonal init), stored as [in, 3H] / [H, 3H], gates [r|z|n]
    p["wih"] = (1.0 / HIDDEN ** 0.5) * jax.random.normal(ks[2], (HIDDEN, 3 * HIDDEN), jnp.float32)
    p["whh"] = (1.0 / HIDDEN ** 0.5) * jax.random.normal(ks[3], (HIDDEN, 3 * HIDDEN), jnp.float32)
    p["bih"] = jnp.zeros((1, 3 * HIDDEN), jnp.float32)
    p["bhh"] = jnp.zeros((1, 3 * HIDDEN), jnp.float32)
    p["wa1"], p["ba1"] = linear(ks[4], HIDDEN, HIDDEN)
    p["wa2"], p["ba2"] = linear(ks[5], HIDDEN, HIDDEN)
    p["wv1"], p["bv1"] = linear(ks[6], HIDDEN, HIDDEN)
    p["wv2"], p["bv2"] = linear(ks[7], HIDDEN, HIDDEN)
    p["wv3"], p["bv3"] = linear(ks[8], HIDDEN, 1)
    # Categorical dist linear (128 -> n) is not used in forward(); omitted.
    return p


def prepare_kernel_params(p):
    """Fuse / pad / cast the f32 math params into the kernel layout (done once, host-side)."""
    bf16 = jnp.bfloat16
    H = HIDDEN
    num_inputs = p["w1"].shape[0]
    k_pad = max(LANE, ((num_inputs + LANE - 1) // LANE) * LANE)
    w1 = jnp.zeros((k_pad, H), jnp.float32).at[:num_inputs].set(p["w1"])
    return {
        "w1": w1.astype(bf16), "b1": p["b1"],
        "w2": p["w2"].astype(bf16), "b2": p["b2"],
        # fused r/z GRU weights: rows [0:H] multiply x, rows [H:2H] multiply h_prev
        "w_rz": jnp.concatenate([p["wih"][:, :2 * H], p["whh"][:, :2 * H]], axis=0).astype(bf16),
        "b_rz": p["bih"][:, :2 * H] + p["bhh"][:, :2 * H],
        "w_in": p["wih"][:, 2 * H:].astype(bf16), "b_in": p["bih"][:, 2 * H:],
        "w_hn": p["whh"][:, 2 * H:].astype(bf16), "b_hn": p["bhh"][:, 2 * H:],
        # fused actor/value first layers: cols [0:H] -> a_fc1, cols [H:2H] -> v_fc1
        "w_av1": jnp.concatenate([p["wa1"], p["wv1"]], axis=1).astype(bf16),
        "b_av1": jnp.concatenate([p["ba1"], p["bv1"]], axis=1),
        "wa2": p["wa2"].astype(bf16), "ba2": p["ba2"],
        "wv2": p["wv2"].astype(bf16), "bv2": p["bv2"],
        "wv3_row": p["wv3"].T,      # [1, 128] f32, used as a lane reduce
        "bv3": p["bv3"],
    }


def reference_forward(inputs, states, masks, p):
    """Pure-JAX f32 reference matching PyTorch semantics, for verification."""
    B = inputs.shape[0]
    x = inputs.reshape(B, -1)
    x = jnp.tanh(x @ p["w1"] + p["b1"])
    x = jnp.tanh(x @ p["w2"] + p["b2"])
    h = states * masks
    gi = x @ p["wih"] + p["bih"]
    gh = h @ p["whh"] + p["bhh"]
    r = jax.nn.sigmoid(gi[:, :HIDDEN] + gh[:, :HIDDEN])
    z = jax.nn.sigmoid(gi[:, HIDDEN:2 * HIDDEN] + gh[:, HIDDEN:2 * HIDDEN])
    n = jnp.tanh(gi[:, 2 * HIDDEN:] + r * gh[:, 2 * HIDDEN:])
    h_new = (1.0 - z) * n + z * h
    a = jnp.tanh(h_new @ p["wa1"] + p["ba1"]) @ p["wa2"] + p["ba2"]
    v = jnp.tanh(h_new @ p["wv1"] + p["bv1"])
    v = jnp.tanh(v @ p["wv2"] + p["bv2"])
    v = v @ p["wv3"] + p["bv3"]
    return v, a, h_new


if __name__ == "__main__":
    key = jax.random.PRNGKey(0)
    k_in, k_st, k_ms, k_par = jax.random.split(key, 4)

    B = 8
    inputs = jax.random.normal(k_in, (B, 4, 4, 4), jnp.float32)   # num_inputs = 64
    states = jax.random.normal(k_st, (B, HIDDEN), jnp.float32)
    masks = (jax.random.uniform(k_ms, (B, 1)) > 0.3).astype(jnp.float32)
    params = make_params(k_par, num_inputs=4 * 4 * 4)

    # Compute the f32 reference BEFORE the kernel call: the kernel donates `states`
    # (in-place GRU state update via input_output_aliases).
    v_ref, a_ref, s_ref = reference_forward(inputs, states, masks, params)
    jax.block_until_ready((v_ref, a_ref, s_ref))

    kparams = prepare_kernel_params(params)
    value, actions, new_states = policy_forward(inputs, states, masks, kparams)
    jax.block_until_ready((value, actions, new_states))

    # bf16 MXU inputs -> relaxed tolerance vs the pure-f32 reference.
    assert jnp.allclose(value, v_ref, atol=5e-2), "value mismatch"
    assert jnp.allclose(actions, a_ref, atol=5e-2), "actions mismatch"
    assert jnp.allclose(new_states, s_ref, atol=5e-2), "states mismatch"

    print("KERNEL_OK")
</pallas_src>

<mosaic_0001>
module attributes {stable_mosaic.version = 11 : i64} {
  func.func @policy_kernel(%arg0: memref<8x128xbf16, #tpu.memory_space<vmem>>, %arg1: memref<8x128xf32, #tpu.memory_space<vmem>>, %arg2: memref<8x1xf32, #tpu.memory_space<vmem>>, %arg3: memref<128x128xbf16, #tpu.memory_space<vmem>>, %arg4: memref<1x128xf32, #tpu.memory_space<vmem>>, %arg5: memref<128x128xbf16, #tpu.memory_space<vmem>>, %arg6: memref<1x128xf32, #tpu.memory_space<vmem>>, %arg7: memref<256x256xbf16, #tpu.memory_space<vmem>>, %arg8: memref<1x256xf32, #tpu.memory_space<vmem>>, %arg9: memref<128x128xbf16, #tpu.memory_space<vmem>>, %arg10: memref<1x128xf32, #tpu.memory_space<vmem>>, %arg11: memref<128x128xbf16, #tpu.memory_space<vmem>>, %arg12: memref<1x128xf32, #tpu.memory_space<vmem>>, %arg13: memref<128x256xbf16, #tpu.memory_space<vmem>>, %arg14: memref<1x256xf32, #tpu.memory_space<vmem>>, %arg15: memref<128x128xbf16, #tpu.memory_space<vmem>>, %arg16: memref<1x128xf32, #tpu.memory_space<vmem>>, %arg17: memref<128x128xbf16, #tpu.memory_space<vmem>>, %arg18: memref<1x128xf32, #tpu.memory_space<vmem>>, %arg19: memref<1x128xf32, #tpu.memory_space<vmem>>, %arg20: memref<1x1xf32, #tpu.memory_space<vmem>>, %arg21: memref<8x1xf32, #tpu.memory_space<vmem>>, %arg22: memref<8x128xf32, #tpu.memory_space<vmem>>, %arg23: memref<8x128xf32, #tpu.memory_space<vmem>>) attributes {dimension_semantics = [], scalar_prefetch = 0 : i64, scratch_operands = 0 : i64, tpu.core_type = #tpu.core_type<tc>} {
    %c0 = arith.constant 0 : index
    %c0_0 = arith.constant 0 : index
    %0 = vector.load %arg0[%c0, %c0_0] : memref<8x128xbf16, #tpu.memory_space<vmem>>, vector<8x128xbf16>
    %c0_1 = arith.constant 0 : index
    %c0_2 = arith.constant 0 : index
    %1 = vector.load %arg1[%c0_1, %c0_2] : memref<8x128xf32, #tpu.memory_space<vmem>>, vector<8x128xf32>
    %c0_3 = arith.constant 0 : index
    %c0_4 = arith.constant 0 : index
    %2 = vector.load %arg2[%c0_3, %c0_4] : memref<8x1xf32, #tpu.memory_space<vmem>>, vector<8x1xf32>
    %3 = vector.broadcast %2 : vector<8x1xf32> to vector<8x128xf32>
    %4 = arith.mulf %1, %3 : vector<8x128xf32>
    %c0_5 = arith.constant 0 : index
    %c0_6 = arith.constant 0 : index
    %5 = vector.load %arg3[%c0_5, %c0_6] : memref<128x128xbf16, #tpu.memory_space<vmem>>, vector<128x128xbf16>
    %cst = arith.constant dense<0.000000e+00> : vector<8x128xf32>
    %6 = tpu.matmul %0, %5, %cst {dimension_numbers = #tpu.dot_dimension_numbers<[1], [0], [0], [1], [0, 0, 1, 1], [], []>} : vector<8x128xbf16>, vector<128x128xbf16>, vector<8x128xf32> -> vector<8x128xf32>
    %c0_7 = arith.constant 0 : index
    %c0_8 = arith.constant 0 : index
    %7 = vector.load %arg4[%c0_7, %c0_8] : memref<1x128xf32, #tpu.memory_space<vmem>>, vector<1x128xf32>
    %8 = vector.broadcast %7 : vector<1x128xf32> to vector<8x128xf32>
    %9 = arith.addf %6, %8 : vector<8x128xf32>
    %10 = math.tanh %9 : vector<8x128xf32>
    %11 = arith.truncf %10 : vector<8x128xf32> to vector<8x128xbf16>
    %c0_9 = arith.constant 0 : index
    %c0_10 = arith.constant 0 : index
    %12 = vector.load %arg5[%c0_9, %c0_10] : memref<128x128xbf16, #tpu.memory_space<vmem>>, vector<128x128xbf16>
    %cst_11 = arith.constant dense<0.000000e+00> : vector<8x128xf32>
    %13 = tpu.matmul %11, %12, %cst_11 {dimension_numbers = #tpu.dot_dimension_numbers<[1], [0], [0], [1], [0, 0, 1, 1], [], []>} : vector<8x128xbf16>, vector<128x128xbf16>, vector<8x128xf32> -> vector<8x128xf32>
    %c0_12 = arith.constant 0 : index
    %c0_13 = arith.constant 0 : index
    %14 = vector.load %arg6[%c0_12, %c0_13] : memref<1x128xf32, #tpu.memory_space<vmem>>, vector<1x128xf32>
    %15 = vector.broadcast %14 : vector<1x128xf32> to vector<8x128xf32>
    %16 = arith.addf %13, %15 : vector<8x128xf32>
    %17 = math.tanh %16 : vector<8x128xf32>
    %18 = tpu.concatenate %17, %4 in 1 : vector<8x128xf32>, vector<8x128xf32> -> vector<8x256xf32>
    %19 = arith.truncf %18 : vector<8x256xf32> to vector<8x256xbf16>
    %c0_14 = arith.constant 0 : index
    %c0_15 = arith.constant 0 : index
    %20 = vector.load %arg7[%c0_14, %c0_15] : memref<256x256xbf16, #tpu.memory_space<vmem>>, vector<256x256xbf16>
    %cst_16 = arith.constant dense<0.000000e+00> : vector<8x256xf32>
    %21 = tpu.matmul %19, %20, %cst_16 {dimension_numbers = #tpu.dot_dimension_numbers<[1], [0], [0], [1], [0, 0, 1, 1], [], []>} : vector<8x256xbf16>, vector<256x256xbf16>, vector<8x256xf32> -> vector<8x256xf32>
    %c0_17 = arith.constant 0 : index
    %c0_18 = arith.constant 0 : index
    %22 = vector.load %arg8[%c0_17, %c0_18] : memref<1x256xf32, #tpu.memory_space<vmem>>, vector<1x256xf32>
    %23 = vector.broadcast %22 : vector<1x256xf32> to vector<8x256xf32>
    %24 = arith.addf %21, %23 : vector<8x256xf32>
    %25 = vector.extract_strided_slice %24 {offsets = [0, 0], sizes = [8, 128], strides = [1, 1]} : vector<8x256xf32> to vector<8x128xf32>
    %cst_19 = arith.constant 5.000000e-01 : f32
    %26 = vector.broadcast %cst_19 : f32 to vector<8x128xf32>
    %27 = arith.mulf %26, %25 : vector<8x128xf32>
    %28 = math.tanh %27 : vector<8x128xf32>
    %cst_20 = arith.constant 5.000000e-01 : f32
    %29 = vector.broadcast %cst_20 : f32 to vector<8x128xf32>
    %30 = arith.mulf %29, %28 : vector<8x128xf32>
    %cst_21 = arith.constant 5.000000e-01 : f32
    %31 = vector.broadcast %cst_21 : f32 to vector<8x128xf32>
    %32 = arith.addf %30, %31 : vector<8x128xf32>
    %33 = vector.extract_strided_slice %24 {offsets = [0, 128], sizes = [8, 128], strides = [1, 1]} : vector<8x256xf32> to vector<8x128xf32>
    %cst_22 = arith.constant 5.000000e-01 : f32
    %34 = vector.broadcast %cst_22 : f32 to vector<8x128xf32>
    %35 = arith.mulf %34, %33 : vector<8x128xf32>
    %36 = math.tanh %35 : vector<8x128xf32>
    %cst_23 = arith.constant 5.000000e-01 : f32
    %37 = vector.broadcast %cst_23 : f32 to vector<8x128xf32>
    %38 = arith.mulf %37, %36 : vector<8x128xf32>
    %cst_24 = arith.constant 5.000000e-01 : f32
    %39 = vector.broadcast %cst_24 : f32 to vector<8x128xf32>
    %40 = arith.addf %38, %39 : vector<8x128xf32>
    %41 = arith.truncf %17 : vector<8x128xf32> to vector<8x128xbf16>
    %c0_25 = arith.constant 0 : index
    %c0_26 = arith.constant 0 : index
    %42 = vector.load %arg9[%c0_25, %c0_26] : memref<128x128xbf16, #tpu.memory_space<vmem>>, vector<128x128xbf16>
    %cst_27 = arith.constant dense<0.000000e+00> : vector<8x128xf32>
    %43 = tpu.matmul %41, %42, %cst_27 {dimension_numbers = #tpu.dot_dimension_numbers<[1], [0], [0], [1], [0, 0, 1, 1], [], []>} : vector<8x128xbf16>, vector<128x128xbf16>, vector<8x128xf32> -> vector<8x128xf32>
    %c0_28 = arith.constant 0 : index
    %c0_29 = arith.constant 0 : index
    %44 = vector.load %arg10[%c0_28, %c0_29] : memref<1x128xf32, #tpu.memory_space<vmem>>, vector<1x128xf32>
    %45 = vector.broadcast %44 : vector<1x128xf32> to vector<8x128xf32>
    %46 = arith.addf %43, %45 : vector<8x128xf32>
    %47 = arith.truncf %4 : vector<8x128xf32> to vector<8x128xbf16>
    %c0_30 = arith.constant 0 : index
    %c0_31 = arith.constant 0 : index
    %48 = vector.load %arg11[%c0_30, %c0_31] : memref<128x128xbf16, #tpu.memory_space<vmem>>, vector<128x128xbf16>
    %cst_32 = arith.constant dense<0.000000e+00> : vector<8x128xf32>
    %49 = tpu.matmul %47, %48, %cst_32 {dimension_numbers = #tpu.dot_dimension_numbers<[1], [0], [0], [1], [0, 0, 1, 1], [], []>} : vector<8x128xbf16>, vector<128x128xbf16>, vector<8x128xf32> -> vector<8x128xf32>
    %c0_33 = arith.constant 0 : index
    %c0_34 = arith.constant 0 : index
    %50 = vector.load %arg12[%c0_33, %c0_34] : memref<1x128xf32, #tpu.memory_space<vmem>>, vector<1x128xf32>
    %51 = vector.broadcast %50 : vector<1x128xf32> to vector<8x128xf32>
    %52 = arith.addf %49, %51 : vector<8x128xf32>
    %53 = arith.mulf %32, %52 : vector<8x128xf32>
    %54 = arith.addf %46, %53 : vector<8x128xf32>
    %55 = math.tanh %54 : vector<8x128xf32>
    %cst_35 = arith.constant 1.000000e+00 : f32
    %56 = vector.broadcast %cst_35 : f32 to vector<8x128xf32>
    %57 = arith.subf %56, %40 : vector<8x128xf32>
    %58 = arith.mulf %57, %55 : vector<8x128xf32>
    %59 = arith.mulf %40, %4 : vector<8x128xf32>
    %60 = arith.addf %58, %59 : vector<8x128xf32>
    %c0_36 = arith.constant 0 : index
    %c0_37 = arith.constant 0 : index
    %61 = vector.load %arg23[%c0_36, %c0_37] : memref<8x128xf32, #tpu.memory_space<vmem>>, vector<8x128xf32>
    tpu.vector_store %arg23[%c0_36, %c0_37], %60 {strides = array<i32>} : memref<8x128xf32, #tpu.memory_space<vmem>>, vector<8x128xf32>,
    %62 = arith.truncf %60 : vector<8x128xf32> to vector<8x128xbf16>
    %c0_38 = arith.constant 0 : index
    %c0_39 = arith.constant 0 : index
    %63 = vector.load %arg13[%c0_38, %c0_39] : memref<128x256xbf16, #tpu.memory_space<vmem>>, vector<128x256xbf16>
    %cst_40 = arith.constant dense<0.000000e+00> : vector<8x256xf32>
    %64 = tpu.matmul %62, %63, %cst_40 {dimension_numbers = #tpu.dot_dimension_numbers<[1], [0], [0], [1], [0, 0, 1, 1], [], []>} : vector<8x128xbf16>, vector<128x256xbf16>, vector<8x256xf32> -> vector<8x256xf32>
    %c0_41 = arith.constant 0 : index
    %c0_42 = arith.constant 0 : index
    %65 = vector.load %arg14[%c0_41, %c0_42] : memref<1x256xf32, #tpu.memory_space<vmem>>, vector<1x256xf32>
    %66 = vector.broadcast %65 : vector<1x256xf32> to vector<8x256xf32>
    %67 = arith.addf %64, %66 : vector<8x256xf32>
    %68 = math.tanh %67 : vector<8x256xf32>
    %69 = vector.extract_strided_slice %68 {offsets = [0, 0], sizes = [8, 128], strides = [1, 1]} : vector<8x256xf32> to vector<8x128xf32>
    %70 = vector.extract_strided_slice %68 {offsets = [0, 128], sizes = [8, 128], strides = [1, 1]} : vector<8x256xf32> to vector<8x128xf32>
    %71 = arith.truncf %69 : vector<8x128xf32> to vector<8x128xbf16>
    %c0_43 = arith.constant 0 : index
    %c0_44 = arith.constant 0 : index
    %72 = vector.load %arg15[%c0_43, %c0_44] : memref<128x128xbf16, #tpu.memory_space<vmem>>, vector<128x128xbf16>
    %cst_45 = arith.constant dense<0.000000e+00> : vector<8x128xf32>
    %73 = tpu.matmul %71, %72, %cst_45 {dimension_numbers = #tpu.dot_dimension_numbers<[1], [0], [0], [1], [0, 0, 1, 1], [], []>} : vector<8x128xbf16>, vector<128x128xbf16>, vector<8x128xf32> -> vector<8x128xf32>
    %c0_46 = arith.constant 0 : index
    %c0_47 = arith.constant 0 : index
    %74 = vector.load %arg16[%c0_46, %c0_47] : memref<1x128xf32, #tpu.memory_space<vmem>>, vector<1x128xf32>
    %75 = vector.broadcast %74 : vector<1x128xf32> to vector<8x128xf32>
    %76 = arith.addf %73, %75 : vector<8x128xf32>
    %c0_48 = arith.constant 0 : index
    %c0_49 = arith.constant 0 : index
    %77 = vector.load %arg22[%c0_48, %c0_49] : memref<8x128xf32, #tpu.memory_space<vmem>>, vector<8x128xf32>
    tpu.vector_store %arg22[%c0_48, %c0_49], %76 {strides = array<i32>} : memref<8x128xf32, #tpu.memory_space<vmem>>, vector<8x128xf32>,
    %78 = arith.truncf %70 : vector<8x128xf32> to vector<8x128xbf16>
    %c0_50 = arith.constant 0 : index
    %c0_51 = arith.constant 0 : index
    %79 = vector.load %arg17[%c0_50, %c0_51] : memref<128x128xbf16, #tpu.memory_space<vmem>>, vector<128x128xbf16>
    %cst_52 = arith.constant dense<0.000000e+00> : vector<8x128xf32>
    %80 = tpu.matmul %78, %79, %cst_52 {dimension_numbers = #tpu.dot_dimension_numbers<[1], [0], [0], [1], [0, 0, 1, 1], [], []>} : vector<8x128xbf16>, vector<128x128xbf16>, vector<8x128xf32> -> vector<8x128xf32>
    %c0_53 = arith.constant 0 : index
    %c0_54 = arith.constant 0 : index
    %81 = vector.load %arg18[%c0_53, %c0_54] : memref<1x128xf32, #tpu.memory_space<vmem>>, vector<1x128xf32>
    %82 = vector.broadcast %81 : vector<1x128xf32> to vector<8x128xf32>
    %83 = arith.addf %80, %82 : vector<8x128xf32>
    %84 = math.tanh %83 : vector<8x128xf32>
    %c0_55 = arith.constant 0 : index
    %c0_56 = arith.constant 0 : index
    %85 = vector.load %arg19[%c0_55, %c0_56] : memref<1x128xf32, #tpu.memory_space<vmem>>, vector<1x128xf32>
    %86 = vector.broadcast %85 : vector<1x128xf32> to vector<8x128xf32>
    %87 = arith.mulf %84, %86 : vector<8x128xf32>
    %cst_57 = arith.constant dense<0.000000e+00> : vector<8xf32>
    %88 = vector.multi_reduction <add>, %87, %cst_57 [1] : vector<8x128xf32> to vector<8xf32>
    %89 = vector.shape_cast %88 : vector<8xf32> to vector<8x1xf32>
    %c0_58 = arith.constant 0 : index
    %c0_59 = arith.constant 0 : index
    %90 = vector.load %arg20[%c0_58, %c0_59] : memref<1x1xf32, #tpu.memory_space<vmem>>, vector<1x1xf32>
    %91 = vector.broadcast %90 : vector<1x1xf32> to vector<8x1xf32>
    %92 = arith.addf %89, %91 : vector<8x1xf32>
    %c0_60 = arith.constant 0 : index
    %c0_61 = arith.constant 0 : index
    %93 = vector.load %arg21[%c0_60, %c0_61] : memref<8x1xf32, #tpu.memory_space<vmem>>, vector<8x1xf32>
    tpu.vector_store %arg21[%c0_60, %c0_61], %92 {strides = array<i32>} : memref<8x1xf32, #tpu.memory_space<vmem>>, vector<8x1xf32>,
    return
  }
}

</mosaic_0001>

<bundles_post_ra>
// kernel: policy_forward.1
= control target key start
LH: loop header
LB: loop body
LE: loop exit
PB: predicated region body
PF: predicated region fallthrough
CT: control target
= control target key end

     0   :  { %s2414_s0 = inlined_call_operand.vmem [shape: bf16[8,128], index: 0, kind: input, shape index: {}]   ;;  %s2415_s1 = inlined_call_operand.vmem [shape: f32[8,128], index: 1, kind: input, shape index: {}, may-alias: {1,23}]   ;;  %s2416_s2 = inlined_call_operand.vmem [shape: f32[8,1], index: 2, kind: input, shape index: {}]   ;;  %s2417_s3 = inlined_call_operand.vmem [shape: bf16[128,128], index: 3, kind: input, shape index: {}]   ;;  %s2418_s4 = inlined_call_operand.vmem [shape: f32[1,128], index: 4, kind: input, shape index: {}]   ;;  %s2419_s5 = inlined_call_operand.hbm [shape: bf16[128,128], index: 5, kind: input, shape index: {}]   ;;  %s2420_s6 = inlined_call_operand.vmem [shape: f32[1,128], index: 6, kind: input, shape index: {}]   ;;  %s2421_s7 = inlined_call_operand.hbm [shape: bf16[256,256], index: 7, kind: input, shape index: {}]   ;;  %s2422_s8 = inlined_call_operand.vmem [shape: f32[1,256], index: 8, kind: input, shape index: {}]   ;;  %s2423_s9 = inlined_call_operand.hbm [shape: bf16[128,128], index: 9, kind: input, shape index: {}]   ;;  %s2424_s10 = inlined_call_operand.vmem [shape: f32[1,128], index: 10, kind: input, shape index: {}]   ;;  %s2425_s11 = inlined_call_operand.hbm [shape: bf16[128,128], index: 11, kind: input, shape index: {}]   ;;  %s2426_s12 = inlined_call_operand.vmem [shape: f32[1,128], index: 12, kind: input, shape index: {}]   ;;  %s2427_s13 = inlined_call_operand.vmem [shape: bf16[128,256], index: 13, kind: input, shape index: {}]   ;;  %s2428_s14 = inlined_call_operand.vmem [shape: f32[1,256], index: 14, kind: input, shape index: {}]   ;;  %s2429_s15 = inlined_call_operand.hbm [shape: bf16[128,128], index: 15, kind: input, shape index: {}]   ;;  %s2430_s16 = inlined_call_operand.vmem [shape: f32[1,128], index: 16, kind: input, shape index: {}]   ;;  %s2431_s17 = inlined_call_operand.hbm [shape: bf16[128,128], index: 17, kind: input, shape index: {}]   ;;  %s2432_s18 = inlined_call_operand.hbm [shape: f32[1,128], index: 18, kind: input, shape index: {}]   ;;  %s2433_s19 = inlined_call_operand.hbm [shape: f32[1,128], index: 19, kind: input, shape index: {}]   ;;  %s2434_s20 = inlined_call_operand.<no memory space> [shape: f32[1,1], index: 20, kind: input, shape index: {}]   ;;  %s2435_s21 = inlined_call_operand.vmem [shape: f32[8,1], index: 21, kind: output, shape index: {0}]   ;;  %s2436_s22 = inlined_call_operand.hbm [shape: f32[8,128], index: 22, kind: output, shape index: {1}]   ;;  %s2437_s23 = inlined_call_operand.vmem [shape: f32[8,128], index: 23, kind: output, shape index: {2}, may-alias: {1,23}]  }
   0x1   :  { %2441 = sst [smem:[#allocation24_spill]] %s2414_s0  ;;  %v29_v0 = vstv %s2434_s20 }
   0x2   :  { %2442 = sst [smem:[#allocation25_spill]] %s2415_s1  ;;  %30 = vst [vmem:[#allocation2] sm:$0x1] %v29_v0 }
   0x3   :  { %2443 = sst [smem:[#allocation26_spill]] %s2416_s2 }
   0x4   :  { %2444 = sst [smem:[#allocation27_spill]] %s2417_s3 }
   0x5   :  { %2445 = sst [smem:[#allocation28_spill]] %s2418_s4 }
   0x6   :  { %2446 = sst [smem:[#allocation29_spill]] %s2419_s5 }
   0x7   :  { %2447 = sst [smem:[#allocation30_spill]] %s2420_s6 }
   0x8   :  { %2448 = sst [smem:[#allocation31_spill]] %s2421_s7 }
   0x9   :  { %2449 = sst [smem:[#allocation32_spill]] %s2435_s21 }
   0xa   :  { %31 = vsyncpa [#allocation4], 0 }
   0xb   :  { %32 = vsyncpa [#allocation7], 0 }
   0xc   :  { %33 = vsyncpa [#allocation10], 0 }
   0xd   :  { %34 = vsyncpa [#allocation13], 0 }
   0xe   :  { %35 = vsyncpa [#allocation16], 0 }
   0xf   :  { %36 = vsyncpa [#allocation5], 0  ;;  %s1965_s24 = smov [#allocation6]   ;;  %s2450_s26 = sld [smem:[#allocation31_spill]] }
  0x10   :  { %s66_s25 = sshll.u32 %s1965_s24, 4  ;;  %s67_s25 = int_to_ptr.vmem [resolvable:$true] %s66_s25 }
  0x15   :  { %s1755_s2 = scalar_lea.hbm %s2450_s26, 4096 }
  0x16   :  { %p1756_p0 = scmp.ne.s32.totalorder %s2450_s26, %s1755_s2  ;;  %p1759_p1 = scmp.lt.u32.totalorder %s1755_s2, %s2450_s26 }
  0x18   :  { %p1761_p2 = pnand %p1759_p1, %p1756_p0 }
  0x1a   :  { %1764 = shalt.err (!%p1761_p2)
}
  0x1b   :  { %s1765_s28 = scalar_lea.vmem %s67_s25, 4096  ;;  %p1770_p4 = scmp.lt.s32.totalorder %s67_s25, %s67_s25 }
  0x1c   :  { %p1766_p3 = scmp.ne.s32.totalorder %s67_s25, %s1765_s28  ;;  %p1771_p5 = scmp.lt.s32.totalorder %s1765_s28, %s1765_s28 }
  0x1e   :  { %p1772_p6 = por %p1771_p5, %p1770_p4 }
  0x20   :  { %p1773_p7 = pnand %p1772_p6, %p1766_p3 }
  0x22   :  { %1776 = shalt.err (!%p1773_p7)
}
  0x23   :  { %s1966_s29 = smov 128   ;;  %s1967_s3 = smov 8  }
  0x24   :  { %72 = dma.hbm_to_vmem [thread:$0]  %s2450_s26, 4096, %s67_s25, [#allocation7], %s1966_s29, %s1966_s29, %s1967_s3  }
  0x25   :  { %s1968_s30 = smov [#allocation9]   ;;  %s1969_s5 = smov [#allocation12]  }
  0x26   :  { %s94_s24 = sshll.u32 %s1968_s30, 4  ;;  %s126_s1 = sshll.u32 %s1969_s5, 4  ;;  %s95_s24 = int_to_ptr.vmem [resolvable:$true] %s94_s24  ;;  %s127_s1 = int_to_ptr.vmem [resolvable:$true] %s126_s1 }
  0x27   :  { %s1777_s27 = scalar_lea.hbm %s2425_s11, 1024 }
  0x28   :  { %p1778_p8 = scmp.ne.s32.totalorder %s2425_s11, %s1777_s27  ;;  %p1781_p9 = scmp.lt.u32.totalorder %s1777_s27, %s2425_s11 }
  0x2a   :  { %p1783_p10 = pnand %p1781_p9, %p1778_p8 }
  0x2c   :  { %1786 = shalt.err (!%p1783_p10)
}
  0x2d   :  { %s1787_s25 = scalar_lea.vmem %s95_s24, 1024  ;;  %p1792_p12 = scmp.lt.s32.totalorder %s95_s24, %s95_s24 }
  0x2e   :  { %p1788_p11 = scmp.ne.s32.totalorder %s95_s24, %s1787_s25  ;;  %p1793_p13 = scmp.lt.s32.totalorder %s1787_s25, %s1787_s25 }
  0x30   :  { %p1794_p0 = por %p1793_p13, %p1792_p12 }
  0x32   :  { %p1795_p1 = pnand %p1794_p0, %p1788_p11 }
  0x34   :  { %1798 = shalt.err (!%p1795_p1)
}
  0x35   :  { %s1970_s26 = smov 64   ;;  %s1971_s29 = smov 4  }
  0x36   :  { %100 = dma.hbm_to_vmem [thread:$0]  %s2425_s11, 1024, %s95_s24, [#allocation10], %s1970_s26, %s1970_s26, %s1971_s29  }
  0x37   :  { %s1799_s30 = scalar_lea.hbm %s2431_s17, 1024 }
  0x38   :  { %p1800_p2 = scmp.ne.s32.totalorder %s2431_s17, %s1799_s30  ;;  %p1803_p3 = scmp.lt.u32.totalorder %s1799_s30, %s2431_s17 }
  0x3a   :  { %p1805_p4 = pnand %p1803_p3, %p1800_p2 }
  0x3c   :  { %1808 = shalt.err (!%p1805_p4)
}
  0x3d   :  { %s1809_s7 = scalar_lea.vmem %s127_s1, 1024  ;;  %p1814_p6 = scmp.lt.s32.totalorder %s127_s1, %s127_s1 }
  0x3e   :  { %p1810_p5 = scmp.ne.s32.totalorder %s127_s1, %s1809_s7  ;;  %p1815_p7 = scmp.lt.s32.totalorder %s1809_s7, %s1809_s7 }
  0x40   :  { %p1816_p8 = por %p1815_p7, %p1814_p6 }
  0x42   :  { %p1817_p9 = pnand %p1816_p8, %p1810_p5 }
  0x44   :  { %1820 = shalt.err (!%p1817_p9)
}
  0x45   :  { %132 = dma.hbm_to_vmem [thread:$0]  %s2431_s17, 1024, %s127_s1, [#allocation13], %s1970_s26, %s1970_s26, %s1971_s29  }
  0x46   :  { %s1972_s20 = smov [#allocation3]   ;;  %s1973_s25 = smov [#allocation8]  }
  0x47   :  { %s52_s28 = sshll.u32 %s1972_s20, 4  ;;  %s80_s3 = sshll.u32 %s1973_s25, 4  ;;  %s53_s28 = int_to_ptr.vmem [resolvable:$true] %s52_s28  ;;  %s81_s3 = int_to_ptr.vmem [resolvable:$true] %s80_s3 }
  0x48   :  { %s2451_s4 = sld [smem:[#allocation29_spill]] }
  0x4e   :  { %s1821_s30 = scalar_lea.hbm %s2451_s4, 1024 }
  0x4f   :  { %p1822_p10 = scmp.ne.s32.totalorder %s2451_s4, %s1821_s30  ;;  %p1825_p11 = scmp.lt.u32.totalorder %s1821_s30, %s2451_s4 }
  0x51   :  { %p1827_p12 = pnand %p1825_p11, %p1822_p10 }
  0x53   :  { %1830 = shalt.err (!%p1827_p12)
}
  0x54   :  { %s1831_s17 = scalar_lea.vmem %s53_s28, 1024  ;;  %p1836_p0 = scmp.lt.s32.totalorder %s53_s28, %s53_s28 }
  0x55   :  { %p1832_p13 = scmp.ne.s32.totalorder %s53_s28, %s1831_s17  ;;  %p1837_p1 = scmp.lt.s32.totalorder %s1831_s17, %s1831_s17 }
  0x57   :  { %p1838_p2 = por %p1837_p1, %p1836_p0 }
  0x59   :  { %p1839_p3 = pnand %p1838_p2, %p1832_p13 }
  0x5b   :  { %1842 = shalt.err (!%p1839_p3)
}
  0x5c   :  { %58 = dma.hbm_to_vmem [thread:$0]  %s2451_s4, 1024, %s53_s28, [#allocation4], %s1970_s26, %s1970_s26, %s1971_s29  }
  0x5d   :  { %s1843_s20 = scalar_lea.hbm %s2423_s9, 1024 }
  0x5e   :  { %p1844_p4 = scmp.ne.s32.totalorder %s2423_s9, %s1843_s20  ;;  %p1847_p5 = scmp.lt.u32.totalorder %s1843_s20, %s2423_s9 }
  0x60   :  { %p1849_p6 = pnand %p1847_p5, %p1844_p4 }
  0x62   :  { %1852 = shalt.err (!%p1849_p6)
}
  0x63   :  { %s1853_s5 = scalar_lea.vmem %s81_s3, 1024  ;;  %p1858_p8 = scmp.lt.s32.totalorder %s81_s3, %s81_s3 }
  0x64   :  { %p1854_p7 = scmp.ne.s32.totalorder %s81_s3, %s1853_s5  ;;  %p1859_p9 = scmp.lt.s32.totalorder %s1853_s5, %s1853_s5 }
  0x66   :  { %p1860_p10 = por %p1859_p9, %p1858_p8 }
  0x68   :  { %p1861_p11 = pnand %p1860_p10, %p1854_p7 }
  0x6a   :  { %1864 = shalt.err (!%p1861_p11)
}
  0x6b   :  { %86 = dma.hbm_to_vmem [thread:$0]  %s2423_s9, 1024, %s81_s3, [#allocation7], %s1970_s26, %s1970_s26, %s1971_s29  }
  0x6c   :  { %s1974_s2 = smov [#allocation11]   ;;  %s1975_s27 = smov [#allocation14]  }
  0x6d   :  { %s112_s6 = sshll.u32 %s1974_s2, 4  ;;  %s139_s17 = sshll.u32 %s1975_s27, 4  ;;  %s113_s6 = int_to_ptr.vmem [resolvable:$true] %s112_s6  ;;  %s140_s17 = int_to_ptr.vmem [resolvable:$true] %s139_s17 }
  0x6e   :  { %s1865_s11 = scalar_lea.hbm %s2429_s15, 1024 }
  0x6f   :  { %p1866_p12 = scmp.ne.s32.totalorder %s2429_s15, %s1865_s11  ;;  %p1869_p13 = scmp.lt.u32.totalorder %s1865_s11, %s2429_s15 }
  0x71   :  { %p1871_p0 = pnand %p1869_p13, %p1866_p12 }
  0x73   :  { %1874 = shalt.err (!%p1871_p0)
}
  0x74   :  { %s1875_s9 = scalar_lea.vmem %s113_s6, 1024  ;;  %p1880_p2 = scmp.lt.s32.totalorder %s113_s6, %s113_s6 }
  0x75   :  { %p1876_p1 = scmp.ne.s32.totalorder %s113_s6, %s1875_s9  ;;  %p1881_p3 = scmp.lt.s32.totalorder %s1875_s9, %s1875_s9 }
  0x77   :  { %p1882_p4 = por %p1881_p3, %p1880_p2 }
  0x79   :  { %p1883_p5 = pnand %p1882_p4, %p1876_p1 }
  0x7b   :  { %1886 = shalt.err (!%p1883_p5)
}
  0x7c   :  { %118 = dma.hbm_to_vmem [thread:$0]  %s2429_s15, 1024, %s113_s6, [#allocation10], %s1970_s26, %s1970_s26, %s1971_s29  }
  0x7d   :  { %s1887_s28 = scalar_lea.hbm %s2432_s18, 16 }
  0x7e   :  { %p1888_p6 = scmp.ne.s32.totalorder %s2432_s18, %s1887_s28  ;;  %p1891_p7 = scmp.lt.u32.totalorder %s1887_s28, %s2432_s18 }
  0x80   :  { %p1893_p8 = pnand %p1891_p7, %p1888_p6 }
  0x82   :  { %1896 = shalt.err (!%p1893_p8)
}
  0x83   :  { %s1897_s7 = scalar_lea.vmem %s140_s17, 16  ;;  %s1901_s11 = scalar_lea.vmem %s140_s17, 32 }
  0x84   :  { %p1898_p9 = scmp.ne.s32.totalorder %s140_s17, %s1897_s7  ;;  %p1902_p10 = scmp.lt.s32.totalorder %s140_s17, %s140_s17 }
  0x85   :  { %p1903_p11 = scmp.lt.s32.totalorder %s1901_s11, %s1897_s7 }
  0x87   :  { %p1904_p12 = por %p1903_p11, %p1902_p10 }
  0x89   :  { %p1905_p13 = pnand %p1904_p12, %p1898_p9 }
  0x8b   :  { %1908 = shalt.err (!%p1905_p13)
}
  0x8c   :  { %142 = dma.hbm_to_vmem [thread:$0]  %s2432_s18, 16, %s140_s17, [#allocation13]  }
  0x8d   :  { %s1976_s29 = smov [#allocation15]   ;;  %s1909_s25 = scalar_lea.hbm %s2433_s19, 16 }
  0x8e   :  { %s149_s6 = sshll.u32 %s1976_s29, 4  ;;  %p1910_p0 = scmp.ne.s32.totalorder %s2433_s19, %s1909_s25  ;;  %s150_s6 = int_to_ptr.vmem [resolvable:$true] %s149_s6 }
  0x8f   :  { %p1913_p1 = scmp.lt.u32.totalorder %s1909_s25, %s2433_s19 }
  0x91   :  { %p1915_p2 = pnand %p1913_p1, %p1910_p0 }
  0x93   :  { %1918 = shalt.err (!%p1915_p2)
}
  0x94   :  { %s1919_s30 = scalar_lea.vmem %s150_s6, 16  ;;  %s1923_s18 = scalar_lea.vmem %s150_s6, 32 }
  0x95   :  { %p1920_p3 = scmp.ne.s32.totalorder %s150_s6, %s1919_s30  ;;  %p1924_p4 = scmp.lt.s32.totalorder %s150_s6, %s150_s6 }
  0x96   :  { %p1925_p5 = scmp.lt.s32.totalorder %s1923_s18, %s1919_s30 }
  0x98   :  { %p1926_p6 = por %p1925_p5, %p1924_p4 }
  0x9a   :  { %p1927_p7 = pnand %p1926_p6, %p1920_p3 }
  0x9c   :  { %1930 = shalt.err (!%p1927_p7)
}
  0x9d   :  { %152 = dma.hbm_to_vmem [thread:$0]  %s2433_s19, 16, %s150_s6, [#allocation16]  }
  0x9e   :  { %1953 = dma.done.wait [#allocation4], 1024  }
  0x9f   :  { %1954 = vsyncadd [#allocation4], 4294966272 }
  0xa0   :  { %1955 = dma.done.wait [#allocation7], 5120  }
  0xa1   :  { %1956 = vsyncadd [#allocation7], 4294962176 }
  0xa2   :  { %1957 = dma.done.wait [#allocation10], 2048  }
  0xa3   :  { %1958 = vsyncadd [#allocation10], 4294965248 }
  0xa4   :  { %1959 = dma.done.wait [#allocation13], 1040  }
  0xa5   :  { %1960 = vsyncadd [#allocation13], 4294966256 }
  0xa6   :  { %1961 = dma.done.wait [#allocation16], 16  }
  0xa7   :  { %1962 = vsyncadd [#allocation16], 4294967280  ;;  %v1977_v1 = vmov 0.0   ;;  %vm1978_vm0 = vmmov 0   ;;  %s2452_s4 = sld [smem:[#allocation27_spill]]  ;;  %v1627_v5 = vld [vmem:[#allocation3] sm:$0xff]  }
  0xa8   :  { %1482 = vmatprep.subr.bf16.mxu0 %v1977_v1  ;;  %1498 = vmatprep.mubr.msk.bf16.mxu0 %vm1978_vm0, %v1977_v1  ;;  %v1628_v7 = vld [vmem:[#allocation3 + $0x8] sm:$0xff]   ;;  %v1629_v9 = vld [vmem:[#allocation3 + $0x10] sm:$0xff]   ;;  %v1630_v11 = vld [vmem:[#allocation3 + $0x18] sm:$0xff]   ;;  %s2453_s30 = sld [smem:[#allocation24_spill]]  ;;  %s2454_s5 = sld [smem:[#allocation26_spill]]  ;;  %v1979_v22 = vmov 0  }
  0xa9   :  { %1502 = vmatprep.subr.bf16.mxu1 %v1977_v1  ;;  %1518 = vmatprep.mubr.msk.bf16.mxu1 %vm1978_vm0, %v1977_v1  ;;  %v1631_v15 = vld [vmem:[#allocation3 + $0x20] sm:$0xff]   ;;  %v1632_v16 = vld [vmem:[#allocation3 + $0x28] sm:$0xff]   ;;  %v1633_v17 = vld [vmem:[#allocation3 + $0x30] sm:$0xff]   ;;  %s2456_s1 = sld [smem:[#allocation25_spill]]  ;;  %s2457_s15 = sld [smem:[#allocation30_spill]] }
  0xaa   :  { %1503 = vmatpush3.bf16.msra.mxu1 %v1627_v5  ;;  %v1634_v18 = vld [vmem:[#allocation3 + $0x38] sm:$0xff]   ;;  %v1635_v20 = vld [vmem:[#allocation6] ss:$8 sps:$4 sm:$0xff]   ;;  %v1637_v21 = vld [vmem:[#allocation6 + $0x4] ss:$8 sps:$4 sm:$0xff]   ;;  %1618 = vset.pattern.permute.xlu0 %v1979_v22  ;;  %s1980_s28 = smov [#allocation17]  }
  0xab   :  { %1504 = vmatprep.subr.bf16.mxu1 %v1977_v1  ;;  %v1640_v23 = vld [vmem:[#allocation6 + $0x14] ss:$8 sps:$4 sm:$0xff]   ;;  %v1638_v24 = vld [vmem:[#allocation6 + $0x10] ss:$8 sps:$4 sm:$0xff]   ;;  %v1643_v25 = vld [vmem:[#allocation6 + $0x24] ss:$8 sps:$4 sm:$0xff]  }
  0xac   :  { %v1641_v26 = vld [vmem:[#allocation6 + $0x20] ss:$8 sps:$4 sm:$0xff]   ;;  %v1646_v27 = vld [vmem:[#allocation6 + $0x34] ss:$8 sps:$4 sm:$0xff]   ;;  %v1644_v28 = vld [vmem:[#allocation6 + $0x30] ss:$8 sps:$4 sm:$0xff]  }
  0xad   :  { %v1619_v2 = vld [vmem:[%s2452_s4] sm:$0xff]   ;;  %v1620_v3 = vld [vmem:[%s2452_s4 + $0x8] sm:$0xff]   ;;  %v1621_v4 = vld [vmem:[%s2452_s4 + $0x10] sm:$0xff]  }
  0xae   :  { %1483 = vmatpush3.bf16.msra.mxu0 %v1619_v2  ;;  %v1622_v6 = vld [vmem:[%s2452_s4 + $0x18] sm:$0xff]   ;;  %v1623_v8 = vld [vmem:[%s2452_s4 + $0x20] sm:$0xff]   ;;  %1505 = vmatpush3.bf16.msra.mxu1 %v1628_v7  ;;  %v1624_v10 = vld [vmem:[%s2452_s4 + $0x28] sm:$0xff]  }
  0xaf   :  { %1484 = vmatprep.subr.bf16.mxu0 %v1977_v1  ;;  %1506 = vmatprep.subr.bf16.mxu1 %v1977_v1  ;;  %v1625_v12 = vld [vmem:[%s2452_s4 + $0x30] sm:$0xff]   ;;  %v1626_v13 = vld [vmem:[%s2452_s4 + $0x38] sm:$0xff]   ;;  %v180_v14 = vld [vmem:[%s2453_s30] sm:$0xf]  ;;  %s2455_s4 = sld [smem:[#allocation28_spill]] }
  0xb0   :  { %v182_v19 = vld [vmem:[%s2454_s5] sm:$0xff]  ;;  %v1650_v32 = vld [vmem:[#allocation6 + $0x50] ss:$8 sps:$4 sm:$0xff]   ;;  %v1666_v54 = vld [vmem:[#allocation8 + $0x8] sm:$0xff]  }
  0xb1   :  { %185 = vperm.xlu0 %1618, %v182_v19   ;;  %v1649_v29 = vld [vmem:[#allocation6 + $0x44] ss:$8 sps:$4 sm:$0xff]   ;;  %v1647_v30 = vld [vmem:[#allocation6 + $0x40] ss:$8 sps:$4 sm:$0xff]   ;;  %v1652_v31 = vld [vmem:[#allocation6 + $0x54] ss:$8 sps:$4 sm:$0xff]  }
  0xb2   :  { %1485 = vmatpush3.bf16.msra.mxu0 %v1620_v3  ;;  %1507 = vmatpush3.bf16.msra.mxu1 %v1629_v9  ;;  %v1655_v33 = vld [vmem:[#allocation6 + $0x64] ss:$8 sps:$4 sm:$0xff]   ;;  %v1653_v34 = vld [vmem:[#allocation6 + $0x60] ss:$8 sps:$4 sm:$0xff]   ;;  %v1658_v35 = vld [vmem:[#allocation6 + $0x74] ss:$8 sps:$4 sm:$0xff]  }
  0xb3   :  { %1486 = vmatprep.subr.bf16.mxu0 %v1977_v1  ;;  %1508 = vmatprep.subr.bf16.mxu1 %v1977_v1  ;;  %v1656_v36 = vld [vmem:[#allocation6 + $0x70] ss:$8 sps:$4 sm:$0xff]   ;;  %v1661_v37 = vld [vmem:[#allocation6 + $0x84] ss:$8 sps:$4 sm:$0xff]   ;;  %v1659_v38 = vld [vmem:[#allocation6 + $0x80] ss:$8 sps:$4 sm:$0xff]  }
  0xb4   :  { %v1665_v39 = vld [vmem:[#allocation6 + $0x94] ss:$8 sps:$4 sm:$0xff]   ;;  %v1663_v40 = vld [vmem:[#allocation6 + $0x90] ss:$8 sps:$4 sm:$0xff]   ;;  %v1669_v41 = vld [vmem:[#allocation6 + $0xa4] ss:$8 sps:$4 sm:$0xff]  }
  0xb5   :  { %v1667_v42 = vld [vmem:[#allocation6 + $0xa0] ss:$8 sps:$4 sm:$0xff]   ;;  %v1673_v43 = vld [vmem:[#allocation6 + $0xb4] ss:$8 sps:$4 sm:$0xff]   ;;  %v1671_v44 = vld [vmem:[#allocation6 + $0xb0] ss:$8 sps:$4 sm:$0xff]  }
  0xb6   :  { %1487 = vmatpush3.bf16.msra.mxu0 %v1621_v4  ;;  %1509 = vmatpush3.bf16.msra.mxu1 %v1630_v11  ;;  %v1324_v45 = vld [vmem:[%s2455_s4] ss:$0 sm:$0xff]  ;;  %v1662_v52 = vld [vmem:[#allocation8] sm:$0xff]   ;;  %v1670_v55 = vld [vmem:[#allocation8 + $0x10] sm:$0xff]   ;;  %s1305_s4 = sshll.u32 %s1980_s28, 4  ;;  %s1306_s4 = int_to_ptr.vmem [resolvable:$true] %s1305_s4 }
  0xb7   :  { %1488 = vmatprep.subr.bf16.mxu0 %v1977_v1  ;;  %1510 = vmatprep.subr.bf16.mxu1 %v1977_v1  ;;  %v1674_v56 = vld [vmem:[#allocation8 + $0x18] sm:$0xff]   ;;  %v1677_v57 = vld [vmem:[#allocation6 + $0xc4] ss:$8 sps:$4 sm:$0xff]   ;;  %v1675_v59 = vld [vmem:[#allocation6 + $0xc0] ss:$8 sps:$4 sm:$0xff]   ;;  %p1936_p9 = scmp.lt.s32.totalorder %s1306_s4, %s1306_s4 }
  0xb8   :  { %v1678_v58 = vld [vmem:[#allocation8 + $0x20] sm:$0xff]   ;;  %v1681_v60 = vld [vmem:[#allocation6 + $0xd4] ss:$8 sps:$4 sm:$0xff]   ;;  %v1682_v61 = vld [vmem:[#allocation8 + $0x28] sm:$0xff]  }
  0xb9   :  { %v1679_v62 = vld [vmem:[#allocation6 + $0xd0] ss:$8 sps:$4 sm:$0xff]   ;;  %v1685_v63 = vld [vmem:[#allocation6 + $0xe4] ss:$8 sps:$4 sm:$0xff]   ;;  %v1683_v2 = vld [vmem:[#allocation6 + $0xe0] ss:$8 sps:$4 sm:$0xff]  }
  0xba   :  { %1489 = vmatpush3.bf16.msra.mxu0 %v1622_v6  ;;  %1511 = vmatpush3.bf16.msra.mxu1 %v1631_v15  ;;  %v1686_v0 = vld [vmem:[#allocation8 + $0x30] sm:$0xff]   ;;  %v181_v4 = vld [vmem:[%s2456_s1] sm:$0xff]  ;;  %v1692_v19 = vld [vmem:[#allocation9 + $0x8] sm:$0xff]  }
  0xbb   :  { %1490 = vmatprep.subr.bf16.mxu0 %v1977_v1  ;;  %1512 = vmatprep.subr.bf16.mxu1 %v1977_v1  ;;  %v1689_v5 = vld [vmem:[#allocation6 + $0xf4] ss:$8 sps:$4 sm:$0xff]  }
  0xbc   :  { %v1690_v6 = vld [vmem:[#allocation8 + $0x38] sm:$0xff]  }
  0xbe   :  { %1491 = vmatpush3.bf16.msra.mxu0 %v1623_v8  ;;  %1513 = vmatpush3.bf16.msra.mxu1 %v1632_v16  ;;  %v1687_v8 = vld [vmem:[#allocation6 + $0xf0] ss:$8 sps:$4 sm:$0xff]  }
  0xbf   :  { %1492 = vmatprep.subr.bf16.mxu0 %v1977_v1  ;;  %1514 = vmatprep.subr.bf16.mxu1 %v1977_v1 }
  0xc2   :  { %1493 = vmatpush3.bf16.msra.mxu0 %v1624_v10  ;;  %1515 = vmatpush3.bf16.msra.mxu1 %v1633_v17  ;;  %v1333_v10 = vld [vmem:[%s2457_s15] ss:$0 sm:$0xff]  ;;  %v1691_v17 = vld [vmem:[#allocation9] sm:$0xff]  }
  0xc3   :  { %1494 = vmatprep.subr.bf16.mxu0 %v1977_v1  ;;  %1516 = vmatprep.subr.bf16.mxu1 %v1977_v1 }
  0xc6   :  { %1495 = vmatpush3.bf16.msra.mxu0 %v1625_v12  ;;  %1517 = vmatpush3.bf16.msra.mxu1 %v1634_v18 }
  0xc7   :  { %1496 = vmatprep.subr.bf16.mxu0 %v1977_v1  ;;  %1522 = vmatprep.subr.bf16.mxu1 %v1977_v1 }
  0xca   :  { %1497 = vmatpush3.bf16.msra.mxu0 %v1626_v13 }
  0xcb   :  { %620 = vmatprep.subr.bf16.mxu0 %v1637_v21  ;;  %v1694_v21 = vld [vmem:[#allocation9 + $0x18] sm:$0xff]  }
  0xcd   :  { %1499 = vmatmul.mubr.bf16.vlgmr.msra.gmra.mrb[0].mxu0 %v180_v14 }
  0xce   :  { %621 = vmatpush1.bf16.msra.mxu0 %v1635_v20  ;;  %v1693_v20 = vld [vmem:[#allocation9 + $0x10] sm:$0xff]  }
  0xcf   :  { %622 = vmatprep.subr.bf16.mxu0 %v1640_v23  ;;  %v1695_v23 = vld [vmem:[#allocation9 + $0x20] sm:$0xff]  }
  0xd2   :  { %623 = vmatpush1.bf16.msra.mxu0 %v1638_v24  ;;  %v1696_v24 = vld [vmem:[#allocation9 + $0x28] sm:$0xff]  }
  0xd3   :  { %624 = vmatprep.subr.bf16.mxu0 %v1643_v25  ;;  %v1697_v25 = vld [vmem:[#allocation9 + $0x30] sm:$0xff]  }
  0xd6   :  { %625 = vmatpush1.bf16.msra.mxu0 %v1641_v26  ;;  %v1699_v26 = vld [vmem:[%s2427_s13] ss:$8 sps:$4 sm:$0xff]  }
  0xd7   :  { %626 = vmatprep.subr.bf16.mxu0 %v1646_v27  ;;  %v1701_v27 = vld [vmem:[%s2427_s13 + $0x4] ss:$8 sps:$4 sm:$0xff]  }
  0xda   :  { %627 = vmatpush1.bf16.msra.mxu0 %v1644_v28  ;;  %v1704_v28 = vld [vmem:[%s2427_s13 + $0x14] ss:$8 sps:$4 sm:$0xff]  }
  0xdb   :  { %628 = vmatprep.subr.bf16.mxu0 %v1649_v29  ;;  %v1702_v29 = vld [vmem:[%s2427_s13 + $0x10] ss:$8 sps:$4 sm:$0xff]  }
  0xde   :  { %629 = vmatpush1.bf16.msra.mxu0 %v1647_v30  ;;  %v1707_v30 = vld [vmem:[%s2427_s13 + $0x24] ss:$8 sps:$4 sm:$0xff]  }
  0xdf   :  { %630 = vmatprep.subr.bf16.mxu0 %v1652_v31  ;;  %v1705_v31 = vld [vmem:[%s2427_s13 + $0x20] ss:$8 sps:$4 sm:$0xff]  }
  0xe2   :  { %631 = vmatpush1.bf16.msra.mxu0 %v1650_v32  ;;  %v1710_v32 = vld [vmem:[%s2427_s13 + $0x34] ss:$8 sps:$4 sm:$0xff]  }
  0xe3   :  { %632 = vmatprep.subr.bf16.mxu0 %v1655_v33  ;;  %v1708_v33 = vld [vmem:[%s2427_s13 + $0x30] ss:$8 sps:$4 sm:$0xff]  }
  0xe6   :  { %633 = vmatpush1.bf16.msra.mxu0 %v1653_v34  ;;  %v1713_v34 = vld [vmem:[%s2427_s13 + $0x44] ss:$8 sps:$4 sm:$0xff]  }
  0xe7   :  { %634 = vmatprep.subr.bf16.mxu0 %v1658_v35  ;;  %v1711_v35 = vld [vmem:[%s2427_s13 + $0x40] ss:$8 sps:$4 sm:$0xff]  }
  0xea   :  { %635 = vmatpush1.bf16.msra.mxu0 %v1656_v36  ;;  %v1716_v36 = vld [vmem:[%s2427_s13 + $0x54] ss:$8 sps:$4 sm:$0xff]  }
  0xeb   :  { %636 = vmatprep.subr.bf16.mxu0 %v1661_v37  ;;  %v1714_v37 = vld [vmem:[%s2427_s13 + $0x50] ss:$8 sps:$4 sm:$0xff]  }
  0xee   :  { %637 = vmatpush1.bf16.msra.mxu0 %v1659_v38  ;;  %v1719_v38 = vld [vmem:[%s2427_s13 + $0x64] ss:$8 sps:$4 sm:$0xff]  }
  0xef   :  { %638 = vmatprep.subr.bf16.mxu0 %v1665_v39  ;;  %v1717_v39 = vld [vmem:[%s2427_s13 + $0x60] ss:$8 sps:$4 sm:$0xff]  }
  0xf2   :  { %639 = vmatpush1.bf16.msra.mxu0 %v1663_v40  ;;  %v1722_v40 = vld [vmem:[%s2427_s13 + $0x74] ss:$8 sps:$4 sm:$0xff]  }
  0xf3   :  { %640 = vmatprep.subr.bf16.mxu0 %v1669_v41  ;;  %v1720_v41 = vld [vmem:[%s2427_s13 + $0x70] ss:$8 sps:$4 sm:$0xff]  }
  0xf6   :  { %641 = vmatpush1.bf16.msra.mxu0 %v1667_v42  ;;  %v1723_v42 = vld [vmem:[#allocation11] sm:$0xff]  }
  0xf7   :  { %642 = vmatprep.subr.bf16.mxu0 %v1673_v43  ;;  %v1725_v43 = vld [vmem:[#allocation11 + $0x8] sm:$0xff]  }
  0xfa   :  { %643 = vmatpush1.bf16.msra.mxu0 %v1671_v44  ;;  %v1727_v44 = vld [vmem:[#allocation11 + $0x10] sm:$0xff]  }
  0xfb   :  { %644 = vmatprep.subr.bf16.mxu0 %v1677_v57 }
  0xfe   :  { %645 = vmatpush1.bf16.msra.mxu0 %v1675_v59 }
  0xff   :  { %646 = vmatprep.subr.bf16.mxu0 %v1681_v60 }
 0x102   :  { %647 = vmatpush1.bf16.msra.mxu0 %v1679_v62 }
 0x103   :  { %648 = vmatprep.subr.bf16.mxu0 %v1685_v63 }
 0x106   :  { %649 = vmatpush1.bf16.msra.mxu0 %v1683_v2 }
 0x107   :  { %650 = vmatprep.subr.bf16.mxu0 %v1689_v5  ;;  %v1374_v5 = vld [vmem:[%s2424_s10] ss:$0 sm:$0xff] }
 0x10a   :  { %651 = vmatpush1.bf16.msra.mxu0 %v1687_v8 }
 0x10b   :  { %1008 = vmatprep.subr.bf16.mxu0 %v1701_v27  ;;  %v1728_v27 = vld [vmem:[#allocation12 + $0x10] sm:$0xff]  }
 0x130   :  { %v186_v3 = vpop.permute.xlu0 %185 }
 0x131   :  { %v2282_v7 = vmul.f32 %v186_v3, %v181_v4  ;;  %v1383_v4 = vld [vmem:[%s2426_s12] ss:$0 sm:$0xff] }
 0x133   :  { %v415_v9 = vpack.c.bf16 %v2282_v7, %v2282_v7 }
 0x135   :  { %652 = vmatprep.mubr.bf16.mxu0 %v415_v9 }
 0x1a0   :  { %v294_v46 = vpop.f32.mrb[0].mxu0 }
 0x1a1   :  { %v295_v47 = vadd.f32 %v1324_v45, %v294_v46  ;;  %v1500_v48 = vpop.f32.mrb[1].mxu0  ;;  %v1729_v45 = vld [vmem:[#allocation11 + $0x18] sm:$0xff]   ;;  %v450_v46 = vlaneseq }
 0x1a2   :  { %v297_v49 = vpop.f32.mrb[2].mxu0 }
 0x1a3   :  { %1739 = vtanh.f32 %v295_v47  ;;  %v1501_v50 = vpop.f32.mrb[3].mxu0  ;;  %v2356_v47 = vshrl.u32 %v450_v46, 7 }
 0x1a5   :  { %v452_v48 = vsub.s32 0, %v2356_v47  ;;  %v456_v60 = vsub.s32 1, %v2356_v47  ;;  %v1417_v47 = vld [vmem:[#allocation14] ss:$0 sm:$0xff] }
 0x1ad   :  { %v1740_v51 = vpop.eup %1739 }
 0x1ae   :  { %v301_v53 = vpack.c.bf16 %v1740_v51, %v1740_v51  ;;  %v448_v51 = vld [vmem:[%s2422_s8] sm:$0x3] }
 0x1af   :  { %v457_v62 = vrot.slane %v448_v51, %v456_v60 }
 0x1b0   :  { %1519 = vmatmul.mubr.bf16.vlgmr.msra.gmra.mrb[0].mxu1 %v301_v53 }
 0x1b1   :  { %1523 = vmatpush3.bf16.msra.mxu1 %v1662_v52  ;;  %1538 = vmatprep.mubr.msk.bf16.mxu1 %vm1978_vm0, %v1977_v1 }
 0x1b2   :  { %1524 = vmatprep.subr.bf16.mxu1 %v1977_v1 }
 0x1b5   :  { %1525 = vmatpush3.bf16.msra.mxu1 %v1666_v54 }
 0x1b6   :  { %1526 = vmatprep.subr.bf16.mxu1 %v1977_v1 }
 0x1b9   :  { %1527 = vmatpush3.bf16.msra.mxu1 %v1670_v55 }
 0x1ba   :  { %1528 = vmatprep.subr.bf16.mxu1 %v1977_v1 }
 0x1bd   :  { %1529 = vmatpush3.bf16.msra.mxu1 %v1674_v56 }
 0x1be   :  { %1530 = vmatprep.subr.bf16.mxu1 %v1977_v1 }
 0x1c1   :  { %1531 = vmatpush3.bf16.msra.mxu1 %v1678_v58  ;;  %v453_v58 = vrot.slane %v448_v51, %v452_v48 }
 0x1c2   :  { %1532 = vmatprep.subr.bf16.mxu1 %v1977_v1 }
 0x1c5   :  { %1533 = vmatpush3.bf16.msra.mxu1 %v1682_v61 }
 0x1c6   :  { %1534 = vmatprep.subr.bf16.mxu1 %v1977_v1 }
 0x1c9   :  { %1535 = vmatpush3.bf16.msra.mxu1 %v1686_v0 }
 0x1ca   :  { %1536 = vmatprep.subr.bf16.mxu1 %v1977_v1 }
 0x1cd   :  { %1537 = vmatpush3.bf16.msra.mxu1 %v1690_v6 }
 0x1ce   :  { %1542 = vmatprep.subr.bf16.mxu1 %v1977_v1 }
 0x283   :  { %v407_v11 = vpop.f32.mrb[0].mxu1 }
 0x284   :  { %v408_v12 = vadd.f32 %v1333_v10, %v407_v11  ;;  %v1520_v13 = vpop.f32.mrb[1].mxu1 }
 0x285   :  { %v410_v14 = vpop.f32.mrb[2].mxu1 }
 0x286   :  { %1741 = vtanh.f32 %v408_v12  ;;  %v1521_v15 = vpop.f32.mrb[3].mxu1 }
 0x290   :  { %v1742_v16 = vpop.eup %1741 }
 0x291   :  { %v414_v18 = vpack.c.bf16 %v1742_v16, %v1742_v16 }
 0x293   :  { %653 = vmatmul.mubr.bf16.vlgmr.msra.gmra.mrb[4].mxu0 %v414_v18  ;;  %1539 = vmatmul.mubr.bf16.vlgmr.msra.gmra.mrb[4].mxu1 %v414_v18 }
 0x294   :  { %1543 = vmatpush3.bf16.msra.mxu1 %v1691_v17  ;;  %1558 = vmatprep.mubr.msk.bf16.mxu1 %vm1978_vm0, %v1977_v1 }
 0x295   :  { %1544 = vmatprep.subr.bf16.mxu1 %v1977_v1  ;;  %1040 = vmatprep.mubr.bf16.mxu0 %v1979_v22  ;;  %v1698_v22 = vld [vmem:[#allocation9 + $0x38] sm:$0xff]  }
 0x296   :  { %1009 = vmatpush1.bf16.msra.mxu0 %v1699_v26  ;;  %v1726_v26 = vld [vmem:[#allocation12 + $0x8] sm:$0xff]  }
 0x297   :  { %1010 = vmatprep.subr.bf16.mxu0 %v1704_v28  ;;  %v1731_v28 = vld [vmem:[#allocation11 + $0x20] sm:$0xff]  }
 0x298   :  { %1545 = vmatpush3.bf16.msra.mxu1 %v1692_v19 }
 0x299   :  { %1546 = vmatprep.subr.bf16.mxu1 %v1977_v1 }
 0x29a   :  { %1011 = vmatpush1.bf16.msra.mxu0 %v1702_v29  ;;  %v1732_v29 = vld [vmem:[#allocation12 + $0x20] sm:$0xff]  }
 0x29b   :  { %1012 = vmatprep.subr.bf16.mxu0 %v1707_v30  ;;  %v1733_v30 = vld [vmem:[#allocation11 + $0x28] sm:$0xff]  }
 0x29c   :  { %1547 = vmatpush3.bf16.msra.mxu1 %v1693_v20 }
 0x29d   :  { %1548 = vmatprep.subr.bf16.mxu1 %v1977_v1 }
 0x29e   :  { %1013 = vmatpush1.bf16.msra.mxu0 %v1705_v31  ;;  %v1734_v31 = vld [vmem:[#allocation12 + $0x28] sm:$0xff]  }
 0x29f   :  { %1014 = vmatprep.subr.bf16.mxu0 %v1710_v32  ;;  %v1735_v32 = vld [vmem:[#allocation11 + $0x30] sm:$0xff]  }
 0x2a0   :  { %1549 = vmatpush3.bf16.msra.mxu1 %v1694_v21 }
 0x2a1   :  { %1550 = vmatprep.subr.bf16.mxu1 %v1977_v1 }
 0x2a2   :  { %1015 = vmatpush1.bf16.msra.mxu0 %v1708_v33  ;;  %v1736_v33 = vld [vmem:[#allocation12 + $0x30] sm:$0xff]  }
 0x2a3   :  { %1016 = vmatprep.subr.bf16.mxu0 %v1713_v34  ;;  %v1737_v34 = vld [vmem:[#allocation11 + $0x38] sm:$0xff]  }
 0x2a4   :  { %1551 = vmatpush3.bf16.msra.mxu1 %v1695_v23 }
 0x2a5   :  { %1552 = vmatprep.subr.bf16.mxu1 %v1977_v1 }
 0x2a6   :  { %1017 = vmatpush1.bf16.msra.mxu0 %v1711_v35  ;;  %v1738_v35 = vld [vmem:[#allocation12 + $0x38] sm:$0xff]  }
 0x2a7   :  { %1018 = vmatprep.subr.bf16.mxu0 %v1716_v36  ;;  %v916_v36 = vld [vmem:[%s2428_s14] sm:$0x3] }
 0x2a8   :  { %1553 = vmatpush3.bf16.msra.mxu1 %v1696_v24 }
 0x2a9   :  { %1554 = vmatprep.subr.bf16.mxu1 %v1977_v1 }
 0x2aa   :  { %1019 = vmatpush1.bf16.msra.mxu0 %v1714_v37  ;;  %v921_v37 = vrot.slane %v916_v36, %v452_v48  ;;  %v1408_v48 = vld [vmem:[%s2430_s16] ss:$0 sm:$0xff]  ;;  %s1931_s16 = scalar_lea.vmem %s1306_s4, 128 }
 0x2ab   :  { %1020 = vmatprep.subr.bf16.mxu0 %v1719_v38  ;;  %v925_v38 = vrot.slane %v916_v36, %v456_v60  ;;  %v1426_v60 = vld [vmem:[#allocation15] ss:$0 sm:$0xff]  ;;  %p1932_p8 = scmp.ne.s32.totalorder %s1306_s4, %s1931_s16  ;;  %p1937_p10 = scmp.lt.s32.totalorder %s1931_s16, %s1931_s16 }
 0x2ac   :  { %1555 = vmatpush3.bf16.msra.mxu1 %v1697_v25  ;;  %v1724_v25 = vld [vmem:[#allocation12] sm:$0xff]  }
 0x2ad   :  { %1556 = vmatprep.subr.bf16.mxu1 %v1977_v1  ;;  %p1938_p11 = por %p1937_p10, %p1936_p9 }
 0x2ae   :  { %1021 = vmatpush1.bf16.msra.mxu0 %v1717_v39 }
 0x2af   :  { %1022 = vmatprep.subr.bf16.mxu0 %v1722_v40  ;;  %p1939_p12 = pnand %p1938_p11, %p1932_p8 }
 0x2b0   :  { %1557 = vmatpush3.bf16.msra.mxu1 %v1698_v22 }
 0x2b1   :  { %1562 = vmatprep.subr.bf16.mxu1 %v1977_v1 }
 0x2b2   :  { %1023 = vmatpush1.bf16.msra.mxu0 %v1720_v41 }
 0x2b3   :  { %1559 = vmatmul.mubr.bf16.vlgmr.msra.gmra.mrb[8].mxu1 %v415_v9  ;;  %1582 = vmatprep.subr.bf16.mxu0 %v1977_v1 }
 0x2b4   :  { %1578 = vmatprep.mubr.msk.bf16.mxu1 %vm1978_vm0, %v1977_v1  ;;  %1563 = vmatpush3.bf16.msra.mxu1 %v1723_v42 }
 0x2b5   :  { %1564 = vmatprep.subr.bf16.mxu1 %v1977_v1 }
 0x2b8   :  { %1565 = vmatpush3.bf16.msra.mxu1 %v1725_v43 }
 0x2b9   :  { %1566 = vmatprep.subr.bf16.mxu1 %v1977_v1 }
 0x2bc   :  { %1567 = vmatpush3.bf16.msra.mxu1 %v1727_v44 }
 0x2bd   :  { %1568 = vmatprep.subr.bf16.mxu1 %v1977_v1 }
 0x2c0   :  { %1569 = vmatpush3.bf16.msra.mxu1 %v1729_v45 }
 0x2c1   :  { %1570 = vmatprep.subr.bf16.mxu1 %v1977_v1 }
 0x2c4   :  { %1571 = vmatpush3.bf16.msra.mxu1 %v1731_v28 }
 0x2c5   :  { %1572 = vmatprep.subr.bf16.mxu1 %v1977_v1 }
 0x2c8   :  { %1573 = vmatpush3.bf16.msra.mxu1 %v1733_v30 }
 0x2c9   :  { %1574 = vmatprep.subr.bf16.mxu1 %v1977_v1 }
 0x2cc   :  { %1575 = vmatpush3.bf16.msra.mxu1 %v1735_v32 }
 0x2cd   :  { %1576 = vmatprep.subr.bf16.mxu1 %v1977_v1 }
 0x2d0   :  { %1577 = vmatpush3.bf16.msra.mxu1 %v1737_v34 }
 0x366   :  { %v654_v49 = vpop.f32.mrb[4].mxu0  ;;  %v774_v50 = vpop.f32.mrb[4].mxu1 }
 0x367   :  { %v656_v52 = vpop.f32.mrb[5].mxu0  ;;  %v1540_v53 = vpop.f32.mrb[5].mxu1  ;;  %v655_v59 = vadd.f32 %v654_v49, %v453_v58  ;;  %v775_v12 = vadd.f32 %v1374_v5, %v774_v50 }
 0x368   :  { %v658_v54 = vpop.f32.mrb[6].mxu0  ;;  %v777_v55 = vpop.f32.mrb[6].mxu1  ;;  %v657_v63 = vadd.f32 %v656_v52, %v457_v62 }
 0x369   :  { %v659_v56 = vpop.f32.mrb[7].mxu0  ;;  %v1541_v57 = vpop.f32.mrb[7].mxu1  ;;  %v661_v61 = vmul.f32 0.5, %v655_v59 }
 0x36a   :  { %v665_v0 = vmul.f32 0.5, %v657_v63 }
 0x36b   :  { %1743 = vtanh.f32 %v661_v61 }
 0x36c   :  { %1745 = vtanh.f32 %v665_v0 }
 0x375   :  { %v1744_v2 = vpop.eup %1743 }
 0x376   :  { %v663_v3 = vmul.f32 0.5, %v1744_v2  ;;  %v1746_v15 = vpop.eup %1745 }
 0x377   :  { %v667_v17 = vmul.f32 0.5, %v1746_v15 }
 0x378   :  { %v664_v8 = vadd.f32 0.5, %v663_v3 }
 0x379   :  { %v668_v18 = vadd.f32 0.5, %v667_v17 }
 0x37b   :  { %v894_v19 = vsub.f32 1.0, %v668_v18  ;;  %v896_v21 = vmul.f32 %v668_v18, %v2282_v7  ;;  %v1730_v7 = vld [vmem:[#allocation12 + $0x18] sm:$0xff]  }
 0x386   :  { %v885_v6 = vpop.f32.mrb[8].mxu1 }
 0x387   :  { %v886_v9 = vadd.f32 %v1383_v4, %v885_v6  ;;  %v1560_v10 = vpop.f32.mrb[9].mxu1 }
 0x388   :  { %v888_v11 = vpop.f32.mrb[10].mxu1 }
 0x389   :  { %v891_v13 = vmul.f32 %v886_v9, %v664_v8  ;;  %v1561_v14 = vpop.f32.mrb[11].mxu1 }
 0x38b   :  { %v892_v16 = vadd.f32 %v891_v13, %v775_v12 }
 0x38d   :  { %1747 = vtanh.f32 %v892_v16 }
 0x397   :  { %v1748_v20 = vpop.eup %1747 }
 0x398   :  { %v895_v23 = vmul.f32 %v1748_v20, %v894_v19 }
 0x39a   :  { %v897_v24 = vadd.f32 %v896_v21, %v895_v23 }
 0x39c   :  { %898 = vst [vmem:[%s2437_s23] sm:$0xff] %v897_v24  ;;  %v899_v22 = vpack.c.bf16 %v897_v24, %v897_v24 }
 0x39e   :  { %1041 = vmatmul.mubr.bf16.vlgmr.msra.gmra.mrb[8].mxu0 %v899_v22 }
 0x39f   :  { %1583 = vmatpush3.bf16.msra.mxu0 %v1724_v25  ;;  %1598 = vmatprep.mubr.msk.bf16.mxu0 %vm1978_vm0, %v1977_v1 }
 0x3a0   :  { %1584 = vmatprep.subr.bf16.mxu0 %v1977_v1 }
 0x3a3   :  { %1585 = vmatpush3.bf16.msra.mxu0 %v1726_v26 }
 0x3a4   :  { %1586 = vmatprep.subr.bf16.mxu0 %v1977_v1 }
 0x3a7   :  { %1587 = vmatpush3.bf16.msra.mxu0 %v1728_v27 }
 0x3a8   :  { %1588 = vmatprep.subr.bf16.mxu0 %v1977_v1 }
 0x3ab   :  { %1589 = vmatpush3.bf16.msra.mxu0 %v1730_v7 }
 0x3ac   :  { %1590 = vmatprep.subr.bf16.mxu0 %v1977_v1 }
 0x3af   :  { %1591 = vmatpush3.bf16.msra.mxu0 %v1732_v29 }
 0x3b0   :  { %1592 = vmatprep.subr.bf16.mxu0 %v1977_v1 }
 0x3b3   :  { %1593 = vmatpush3.bf16.msra.mxu0 %v1734_v31 }
 0x3b4   :  { %1594 = vmatprep.subr.bf16.mxu0 %v1977_v1 }
 0x3b7   :  { %1595 = vmatpush3.bf16.msra.mxu0 %v1736_v33 }
 0x3b8   :  { %1596 = vmatprep.subr.bf16.mxu0 %v1977_v1 }
 0x3bb   :  { %1597 = vmatpush3.bf16.msra.mxu0 %v1738_v35 }
 0x471   :  { %v1042_v39 = vpop.f32.mrb[8].mxu0 }
 0x472   :  { %v1043_v40 = vadd.f32 %v1042_v39, %v921_v37  ;;  %v1044_v41 = vpop.f32.mrb[9].mxu0 }
 0x473   :  { %v1045_v42 = vadd.f32 %v1044_v41, %v925_v38  ;;  %v1046_v43 = vpop.f32.mrb[10].mxu0 }
 0x474   :  { %1749 = vtanh.f32 %v1043_v40  ;;  %v1047_v1 = vpop.f32.mrb[11].mxu0 }
 0x475   :  { %1751 = vtanh.f32 %v1045_v42 }
 0x47e   :  { %v1750_v44 = vpop.eup %1749 }
 0x47f   :  { %v1752_v45 = vpop.eup %1751  ;;  %v1051_v46 = vpack.c.bf16 %v1750_v44, %v1750_v44 }
 0x480   :  { %v1164_v49 = vpack.c.bf16 %v1752_v45, %v1752_v45 }
 0x481   :  { %1579 = vmatmul.mubr.bf16.vlgmr.msra.gmra.mrb[12].mxu1 %v1051_v46 }
 0x482   :  { %1599 = vmatmul.mubr.bf16.vlgmr.msra.gmra.mrb[12].mxu0 %v1164_v49 }
 0x554   :  { %v1157_v50 = vpop.f32.mrb[12].mxu1 }
 0x555   :  { %v1158_v51 = vadd.f32 %v1408_v48, %v1157_v50  ;;  %v1580_v52 = vpop.f32.mrb[13].mxu1  ;;  %v1270_v53 = vpop.f32.mrb[12].mxu0 }
 0x556   :  { %v1271_v54 = vadd.f32 %v1417_v47, %v1270_v53  ;;  %v1160_v55 = vpop.f32.mrb[14].mxu1  ;;  %v1600_v56 = vpop.f32.mrb[13].mxu0 }
 0x557   :  { %1163 = vst [vmem:[#allocation17] sm:$0xff] %v1158_v51  ;;  %v1581_v57 = vpop.f32.mrb[15].mxu1  ;;  %v1273_v58 = vpop.f32.mrb[14].mxu0 }
 0x558   :  { %1753 = vtanh.f32 %v1271_v54  ;;  %v1601_v59 = vpop.f32.mrb[15].mxu0 }
 0x562   :  { %v1754_v61 = vpop.eup %1753 }
 0x563   :  { %v1284_v62 = vmul.f32 %v1754_v61, %v1426_v60 }
 0x565   :  { %1285 = vadd.xlane.f32.xlu0 %v1284_v62 }
 0x566   :  { %1942 = shalt.err (!%p1939_p12)
}
 0x567   :  { %s1943_s1 = scalar_lea.hbm %s2436_s22, 128 }
 0x568   :  { %p1944_p13 = scmp.ne.s32.totalorder %s2436_s22, %s1943_s1  ;;  %p1947_p0 = scmp.lt.u32.totalorder %s1943_s1, %s2436_s22 }
 0x56a   :  { %p1949_p1 = pnand %p1947_p0, %p1944_p13 }
 0x56c   :  { %1952 = shalt.err (!%p1949_p1)
}
 0x56d   :  { %1308 = dma.vmem_to_hbm [thread:$0]  %s1306_s4, 128, %s2436_s22, [#allocation5]   ;;  %v1427_v63 = vld [vmem:[#allocation2] ss:$0 sm:$0xff]  ;;  %vm1295_vm1 = vcmask 7168  }
 0x56e   :  { %s2458_s25 = sld [smem:[#allocation32_spill]] }
 0x5f2   :  { %v1286_v0 = vpop.xlane.xlu0 %1285 }
 0x5f3   :  { %v1294_v2 = vadd.f32 %v1427_v63, %v1286_v0 }
 0x5f5   :  { %1296 = vst.msk [vmem:[%s2458_s25] sm:$0xff] %vm1295_vm1, %v1294_v2 }
 0x5f6   :  { %1963 = dma.done.wait [#allocation5], 128  }
 0x5f7   :  { %1964 = vsyncadd [#allocation5], 4294967168 }
 0x5f8   :  { %1318 = vsyncpa [#allocation4], 1 }
 0x5f9   :  { %1319 = vsyncpa [#allocation7], 1 }
 0x5fa   :  { %1320 = vsyncpa [#allocation10], 1 }
 0x5fb   :  { %1321 = vsyncpa [#allocation13], 1 }
 0x5fc   :  { %1322 = vsyncpa [#allocation16], 1 }
 0x5fd   :  { %1323 = vsyncpa [#allocation5], 1 }

</bundles_post_ra>
